<compile_context>
chip_gen: v7x
topology: tpu7x:2x2x1
jax: 0.10.0
libtpu: 0.0.40
codegen_flags: <defaults>
</compile_context>

<pallas_src>
import functools

import jax
import jax.numpy as jnp
from jax.experimental import pallas as pl
from jax.experimental.pallas import tpu as pltpu


def _round_up(n, m):
    return (n + m - 1) // m * m


def _tpu_defaults():
    """Per-generation tiling defaults: (lane multiple, row tile, vmem limit)."""
    kind = ""
    try:
        kind = jax.devices()[0].device_kind.lower()
    except Exception:  # pragma: no cover - defensive only
        pass
    if "v5e" in kind or "v5 lite" in kind or "v5lite" in kind:
        # v5e: 128 MiB VMEM, 4x(128x128) MXU -> 128 alignment is enough.
        return dict(lane_multiple=128, block_rows=512,
                    vmem_limit=100 * 1024 * 1024)
    if "v6" in kind:
        # v6e: 128 MiB VMEM, 2x(256x256) MXU -> 256 alignment, big row tiles.
        return dict(lane_multiple=256, block_rows=512,
                    vmem_limit=100 * 1024 * 1024)
    if "7" in kind:
        # v7x: 64 MiB VMEM per TC -> keep the limit <= ~56 MiB; TM=512 is fine
        # once the resident weights are single-buffered.
        return dict(lane_multiple=256, block_rows=512,
                    vmem_limit=56 * 1024 * 1024)
    # Unknown generation: conservative settings, default scoped VMEM limit.
    return dict(lane_multiple=128, block_rows=256, vmem_limit=None)


def prepare_mlp_params(w1, b1, w2, b2, *, lane_multiple=128):
    """One-time (init-time) weight prep: pad to lane-dense shapes + bf16 cast.

    Hoisted out of the per-call path so each forward call does not re-read the
    f32 weights and re-write bf16 copies in HBM (perf review item #1).
    Zero padding is exact: padded rows/cols contribute nothing.
    """
    D, H = w1.shape
    Dp = _round_up(D, lane_multiple)
    Hp = _round_up(H, lane_multiple)
    w1p = jnp.pad(w1, ((0, Dp - D), (0, Hp - H))).astype(jnp.bfloat16)
    w2p = jnp.pad(w2, ((0, Hp - H), (0, Dp - D))).astype(jnp.bfloat16)
    b1p = jnp.pad(b1, (0, Hp - H)).reshape(1, Hp).astype(jnp.float32)
    b2p = jnp.pad(b2, (0, Dp - D)).reshape(1, Dp).astype(jnp.float32)
    return {"w1": w1p, "b1": b1p, "w2": w2p, "b2": b2p}


def _residual_mlp_kernel(x_ref, w1_ref, b1_ref, w2_ref, b2_ref, o_ref, *,
                         hp, hc):
    """o = x + GELU(x @ W1 + b1) @ W2 + b2, chunked over the hidden dim.

    x tile stays in its input dtype so the residual add is exact; matmul
    operands are cast to bf16 for MXU throughput, accumulating in f32.
    Chunking H keeps the f32 GELU intermediate at (TM, hc) and lets the MXU
    matmuls of chunk c+1 overlap the VPU/EUP GELU of chunk c.
    """
    x = x_ref[...]                                        # (TM, Dp), input dtype
    x_mx = x.astype(jnp.bfloat16)
    acc = x.astype(jnp.float32) + b2_ref[...]             # (TM, Dp) f32
    # Static Python loop over 128-aligned H chunks (ragged last chunk OK:
    # hp and hc are both multiples of 128).
    for lo in range(0, hp, hc):
        size = min(hc, hp - lo)
        h = jnp.dot(x_mx, w1_ref[:, lo:lo + size],
                    preferred_element_type=jnp.float32)   # (TM, size) f32
        h = h + b1_ref[:, lo:lo + size]
        # NOTE: tanh-approximate GELU (jax.nn.gelu default); PyTorch nn.GELU
        # defaults to exact erf.  Documented approximation.
        h = jax.nn.gelu(h, approximate=True)
        acc = acc + jnp.dot(h.astype(jnp.bfloat16), w2_ref[lo:lo + size, :],
                            preferred_element_type=jnp.float32)
    o_ref[...] = acc.astype(o_ref.dtype)


@functools.partial(
    jax.jit,
    static_argnames=("block_rows", "h_chunk", "vmem_limit",
                     "single_buffer_weights"))
def residual_add_mlp(x, w1p, b1p, w2p, b2p, *, block_rows=256, h_chunk=512,
                     vmem_limit=None, single_buffer_weights=True):
    """x: (B, S, D); w*/b* already padded+cast via prepare_mlp_params.

    Returns x + MLP(x), same shape/dtype as x.
    """
    B, S, D = x.shape
    Dp, Hp = w1p.shape
    M = B * S

    # Row tile: multiple of 8 (sublane); Mp a multiple of TM.
    TM = min(block_rows, _round_up(M, 8))
    Mp = _round_up(M, TM)
    hc = min(h_chunk, Hp)

    # Skip pad when already aligned (pure reshape, no extra HBM round-trip).
    x2d = x.reshape(M, D)
    needs_pad = (Mp != M) or (Dp != D)
    if needs_pad:
        x2d = jnp.pad(x2d, ((0, Mp - M), (0, Dp - D)))

    kernel = functools.partial(_residual_mlp_kernel, hp=Hp, hc=hc)

    def resident_spec(shape):
        # Constant index_map -> block fetched once and kept VMEM-resident.
        # Single-buffer it so it does not cost 2x its size in VMEM.
        if single_buffer_weights:
            return pl.BlockSpec(shape, lambda i: (0, 0),
                                pipeline_mode=pl.Buffered(1))
        return pl.BlockSpec(shape, lambda i: (0, 0))

    cp_kwargs = dict(dimension_semantics=("parallel",))
    if vmem_limit is not None:
        cp_kwargs["vmem_limit_bytes"] = vmem_limit

    out2d = pl.pallas_call(
        kernel,
        out_shape=jax.ShapeDtypeStruct((Mp, Dp), x.dtype),
        grid_spec=pl.GridSpec(
            grid=(Mp // TM,),
            in_specs=[
                pl.BlockSpec((TM, Dp), lambda i: (i, 0)),   # x row tile
                resident_spec((Dp, Hp)),                    # W1 (bf16, resident)
                resident_spec((1, Hp)),                     # b1 (f32, resident)
                resident_spec((Hp, Dp)),                    # W2 (bf16, resident)
                resident_spec((1, Dp)),                     # b2 (f32, resident)
            ],
            out_specs=pl.BlockSpec((TM, Dp), lambda i: (i, 0)),
        ),
        compiler_params=pltpu.CompilerParams(**cp_kwargs),
    )(x2d, w1p, b1p, w2p, b2p)

    if needs_pad:
        out2d = out2d[:M, :D]
    return out2d.reshape(B, S, D)


if __name__ == "__main__":
    # Small but lane-dense shapes consistent with a ViT token block.
    B, S, D = 2, 8, 128
    H = 4 * D  # MLP expansion

    key = jax.random.PRNGKey(0)
    kx, k1, k2 = jax.random.split(key, 3)
    x = jax.random.normal(kx, (B, S, D), dtype=jnp.float32)
    # Deterministic parameter init (synthetic; no checkpoint load).
    w1 = jax.random.normal(k1, (D, H), dtype=jnp.float32) * (1.0 / jnp.sqrt(D))
    b1 = jnp.zeros((H,), dtype=jnp.float32)
    w2 = jax.random.normal(k2, (H, D), dtype=jnp.float32) * (1.0 / jnp.sqrt(H))
    b2 = jnp.zeros((D,), dtype=jnp.float32)

    cfg = _tpu_defaults()
    # One-time weight prep (outside the per-call path).
    params = prepare_mlp_params(w1, b1, w2, b2,
                                lane_multiple=cfg["lane_multiple"])
    params = jax.tree_util.tree_map(jax.block_until_ready, params)

    call = functools.partial(residual_add_mlp,
                             block_rows=cfg["block_rows"],
                             h_chunk=512,
                             vmem_limit=cfg["vmem_limit"])
    try:
        out = call(x, params["w1"], params["b1"], params["w2"], params["b2"],
                   single_buffer_weights=True)
        jax.block_until_ready(out)
    except Exception:
        # Fallback for JAX versions / configs that reject
        # BlockSpec(pipeline_mode=pl.Buffered(1)); correctness unchanged,
        # weights just stay double-buffered.
        out = call(x, params["w1"], params["b1"], params["w2"], params["b2"],
                   single_buffer_weights=False)
        jax.block_until_ready(out)

    # Reference with the same numerics as the kernel (bf16 MXU operands,
    # f32 accumulation, f32 residual) — same semantics as x += fn(x).
    xb = x.astype(jnp.bfloat16)
    h_ref = jnp.dot(xb, w1.astype(jnp.bfloat16),
                    preferred_element_type=jnp.float32) + b1
    h_ref = jax.nn.gelu(h_ref, approximate=True)
    y_ref = jnp.dot(h_ref.astype(jnp.bfloat16), w2.astype(jnp.bfloat16),
                    preferred_element_type=jnp.float32) + b2
    ref = x + y_ref

    assert out.shape == x.shape and out.dtype == x.dtype
    assert jnp.allclose(out, ref, atol=2e-2, rtol=2e-2), float(
        jnp.max(jnp.abs(out - ref)))

    print("KERNEL_OK")
</pallas_src>

<mosaic_0001>
module attributes {stable_mosaic.version = 11 : i64} {
  func.func @_residual_mlp_kernel(%arg0: i32, %arg1: memref<16x128xf32, #tpu.memory_space<vmem>>, %arg2: memref<128x512xbf16, #tpu.memory_space<vmem>>, %arg3: memref<1x512xf32, #tpu.memory_space<vmem>>, %arg4: memref<512x128xbf16, #tpu.memory_space<vmem>>, %arg5: memref<1x128xf32, #tpu.memory_space<vmem>>, %arg6: memref<16x128xf32, #tpu.memory_space<vmem>>) attributes {dimension_semantics = [#tpu.dimension_semantics<parallel>], iteration_bounds = array<i64: 1>, scalar_prefetch = 0 : i64, scratch_operands = 0 : i64, tpu.core_type = #tpu.core_type<tc>, window_params = [{transform_indices = @transform_0, window_bounds = array<i64: 16, 128>}, {pipeline_mode = #tpu.pipeline_mode<synchronous>, transform_indices = @transform_1, window_bounds = array<i64: 128, 512>}, {pipeline_mode = #tpu.pipeline_mode<synchronous>, transform_indices = @transform_2, window_bounds = array<i64: 1, 512>}, {pipeline_mode = #tpu.pipeline_mode<synchronous>, transform_indices = @transform_3, window_bounds = array<i64: 512, 128>}, {pipeline_mode = #tpu.pipeline_mode<synchronous>, transform_indices = @transform_4, window_bounds = array<i64: 1, 128>}, {transform_indices = @transform_5, window_bounds = array<i64: 16, 128>}]} {
    %c0 = arith.constant 0 : index
    %c0_0 = arith.constant 0 : index
    %0 = vector.load %arg1[%c0, %c0_0] : memref<16x128xf32, #tpu.memory_space<vmem>>, vector<16x128xf32>
    %1 = arith.truncf %0 : vector<16x128xf32> to vector<16x128xbf16>
    %c0_1 = arith.constant 0 : index
    %c0_2 = arith.constant 0 : index
    %2 = vector.load %arg5[%c0_1, %c0_2] : memref<1x128xf32, #tpu.memory_space<vmem>>, vector<1x128xf32>
    %3 = vector.broadcast %2 : vector<1x128xf32> to vector<16x128xf32>
    %4 = arith.addf %0, %3 : vector<16x128xf32>
    %c0_3 = arith.constant 0 : index
    %c0_4 = arith.constant 0 : index
    %5 = vector.load %arg2[%c0_3, %c0_4] : memref<128x512xbf16, #tpu.memory_space<vmem>>, vector<128x512xbf16>
    %cst = arith.constant dense<0.000000e+00> : vector<16x512xf32>
    %6 = tpu.matmul %1, %5, %cst {dimension_numbers = #tpu.dot_dimension_numbers<[1], [0], [0], [1], [0, 0, 1, 1], [], []>} : vector<16x128xbf16>, vector<128x512xbf16>, vector<16x512xf32> -> vector<16x512xf32>
    %c0_5 = arith.constant 0 : index
    %c0_6 = arith.constant 0 : index
    %7 = vector.load %arg3[%c0_5, %c0_6] : memref<1x512xf32, #tpu.memory_space<vmem>>, vector<1x512xf32>
    %8 = vector.broadcast %7 : vector<1x512xf32> to vector<16x512xf32>
    %9 = arith.addf %6, %8 : vector<16x512xf32>
    %10 = arith.mulf %9, %9 : vector<16x512xf32>
    %11 = arith.mulf %9, %10 : vector<16x512xf32>
    %cst_7 = arith.constant 4.471500e-02 : f32
    %12 = vector.broadcast %cst_7 : f32 to vector<16x512xf32>
    %13 = arith.mulf %12, %11 : vector<16x512xf32>
    %14 = arith.addf %9, %13 : vector<16x512xf32>
    %cst_8 = arith.constant 0.797884583 : f32
    %15 = vector.broadcast %cst_8 : f32 to vector<16x512xf32>
    %16 = arith.mulf %15, %14 : vector<16x512xf32>
    %17 = math.tanh %16 : vector<16x512xf32>
    %cst_9 = arith.constant 1.000000e+00 : f32
    %18 = vector.broadcast %cst_9 : f32 to vector<16x512xf32>
    %19 = arith.addf %18, %17 : vector<16x512xf32>
    %cst_10 = arith.constant 5.000000e-01 : f32
    %20 = vector.broadcast %cst_10 : f32 to vector<16x512xf32>
    %21 = arith.mulf %20, %19 : vector<16x512xf32>
    %22 = arith.mulf %9, %21 : vector<16x512xf32>
    %23 = arith.truncf %22 : vector<16x512xf32> to vector<16x512xbf16>
    %c0_11 = arith.constant 0 : index
    %c0_12 = arith.constant 0 : index
    %24 = vector.load %arg4[%c0_11, %c0_12] : memref<512x128xbf16, #tpu.memory_space<vmem>>, vector<512x128xbf16>
    %cst_13 = arith.constant dense<0.000000e+00> : vector<16x128xf32>
    %25 = tpu.matmul %23, %24, %cst_13 {dimension_numbers = #tpu.dot_dimension_numbers<[1], [0], [0], [1], [0, 0, 1, 1], [], []>} : vector<16x512xbf16>, vector<512x128xbf16>, vector<16x128xf32> -> vector<16x128xf32>
    %26 = arith.addf %4, %25 : vector<16x128xf32>
    %c0_14 = arith.constant 0 : index
    %c0_15 = arith.constant 0 : index
    %27 = vector.load %arg6[%c0_14, %c0_15] : memref<16x128xf32, #tpu.memory_space<vmem>>, vector<16x128xf32>
    tpu.vector_store %arg6[%c0_14, %c0_15], %26 {strides = array<i32>} : memref<16x128xf32, #tpu.memory_space<vmem>>, vector<16x128xf32>,
    return
  }
  func.func @transform_0(%arg0: i32) -> (i32, i32) {
    %c0_i32 = arith.constant 0 : i32
    %c0_i32_0 = arith.constant 0 : i32
    return %arg0, %c0_i32 : i32, i32
  }
  func.func @transform_1(%arg0: i32) -> (i32, i32) {
    %c0_i32 = arith.constant 0 : i32
    %c0_i32_0 = arith.constant 0 : i32
    %c0_i32_1 = arith.constant 0 : i32
    return %c0_i32, %c0_i32_0 : i32, i32
  }
  func.func @transform_2(%arg0: i32) -> (i32, i32) {
    %c0_i32 = arith.constant 0 : i32
    %c0_i32_0 = arith.constant 0 : i32
    %c0_i32_1 = arith.constant 0 : i32
    return %c0_i32, %c0_i32_0 : i32, i32
  }
  func.func @transform_3(%arg0: i32) -> (i32, i32) {
    %c0_i32 = arith.constant 0 : i32
    %c0_i32_0 = arith.constant 0 : i32
    %c0_i32_1 = arith.constant 0 : i32
    return %c0_i32, %c0_i32_0 : i32, i32
  }
  func.func @transform_4(%arg0: i32) -> (i32, i32) {
    %c0_i32 = arith.constant 0 : i32
    %c0_i32_0 = arith.constant 0 : i32
    %c0_i32_1 = arith.constant 0 : i32
    return %c0_i32, %c0_i32_0 : i32, i32
  }
  func.func @transform_5(%arg0: i32) -> (i32, i32) {
    %c0_i32 = arith.constant 0 : i32
    %c0_i32_0 = arith.constant 0 : i32
    return %arg0, %c0_i32 : i32, i32
  }
}

module attributes {stable_mosaic.version = 11 : i64} {
  func.func @_residual_mlp_kernel(%arg0: i32, %arg1: memref<16x128xf32, #tpu.memory_space<vmem>>, %arg2: memref<128x512xbf16, #tpu.memory_space<vmem>>, %arg3: memref<1x512xf32, #tpu.memory_space<vmem>>, %arg4: memref<512x128xbf16, #tpu.memory_space<vmem>>, %arg5: memref<1x128xf32, #tpu.memory_space<vmem>>, %arg6: memref<16x128xf32, #tpu.memory_space<vmem>>) attributes {dimension_semantics = [#tpu.dimension_semantics<parallel>], iteration_bounds = array<i64: 1>, scalar_prefetch = 0 : i64, scratch_operands = 0 : i64, tpu.core_type = #tpu.core_type<tc>, window_params = [{transform_indices = @transform_0, window_bounds = array<i64: 16, 128>}, {pipeline_mode = #tpu.pipeline_mode<synchronous>, transform_indices = @transform_1, window_bounds = array<i64: 128, 512>}, {pipeline_mode = #tpu.pipeline_mode<synchronous>, transform_indices = @transform_2, window_bounds = array<i64: 1, 512>}, {pipeline_mode = #tpu.pipeline_mode<synchronous>, transform_indices = @transform_3, window_bounds = array<i64: 512, 128>}, {pipeline_mode = #tpu.pipeline_mode<synchronous>, transform_indices = @transform_4, window_bounds = array<i64: 1, 128>}, {transform_indices = @transform_5, window_bounds = array<i64: 16, 128>}]} {
    %c0 = arith.constant 0 : index
    %c0_0 = arith.constant 0 : index
    %0 = vector.load %arg1[%c0, %c0_0] : memref<16x128xf32, #tpu.memory_space<vmem>>, vector<16x128xf32>
    %1 = arith.truncf %0 : vector<16x128xf32> to vector<16x128xbf16>
    %c0_1 = arith.constant 0 : index
    %c0_2 = arith.constant 0 : index
    %2 = vector.load %arg5[%c0_1, %c0_2] : memref<1x128xf32, #tpu.memory_space<vmem>>, vector<1x128xf32>
    %3 = vector.broadcast %2 : vector<1x128xf32> to vector<16x128xf32>
    %4 = arith.addf %0, %3 : vector<16x128xf32>
    %c0_3 = arith.constant 0 : index
    %c0_4 = arith.constant 0 : index
    %5 = vector.load %arg2[%c0_3, %c0_4] : memref<128x512xbf16, #tpu.memory_space<vmem>>, vector<128x512xbf16>
    %cst = arith.constant dense<0.000000e+00> : vector<16x512xf32>
    %6 = tpu.matmul %1, %5, %cst {dimension_numbers = #tpu.dot_dimension_numbers<[1], [0], [0], [1], [0, 0, 1, 1], [], []>} : vector<16x128xbf16>, vector<128x512xbf16>, vector<16x512xf32> -> vector<16x512xf32>
    %c0_5 = arith.constant 0 : index
    %c0_6 = arith.constant 0 : index
    %7 = vector.load %arg3[%c0_5, %c0_6] : memref<1x512xf32, #tpu.memory_space<vmem>>, vector<1x512xf32>
    %8 = vector.broadcast %7 : vector<1x512xf32> to vector<16x512xf32>
    %9 = arith.addf %6, %8 : vector<16x512xf32>
    %10 = arith.mulf %9, %9 : vector<16x512xf32>
    %11 = arith.mulf %9, %10 : vector<16x512xf32>
    %cst_7 = arith.constant 4.471500e-02 : f32
    %12 = vector.broadcast %cst_7 : f32 to vector<16x512xf32>
    %13 = arith.mulf %12, %11 : vector<16x512xf32>
    %14 = arith.addf %9, %13 : vector<16x512xf32>
    %cst_8 = arith.constant 0.797884583 : f32
    %15 = vector.broadcast %cst_8 : f32 to vector<16x512xf32>
    %16 = arith.mulf %15, %14 : vector<16x512xf32>
    %17 = math.tanh %16 : vector<16x512xf32>
    %cst_9 = arith.constant 1.000000e+00 : f32
    %18 = vector.broadcast %cst_9 : f32 to vector<16x512xf32>
    %19 = arith.addf %18, %17 : vector<16x512xf32>
    %cst_10 = arith.constant 5.000000e-01 : f32
    %20 = vector.broadcast %cst_10 : f32 to vector<16x512xf32>
    %21 = arith.mulf %20, %19 : vector<16x512xf32>
    %22 = arith.mulf %9, %21 : vector<16x512xf32>
    %23 = arith.truncf %22 : vector<16x512xf32> to vector<16x512xbf16>
    %c0_11 = arith.constant 0 : index
    %c0_12 = arith.constant 0 : index
    %24 = vector.load %arg4[%c0_11, %c0_12] : memref<512x128xbf16, #tpu.memory_space<vmem>>, vector<512x128xbf16>
    %cst_13 = arith.constant dense<0.000000e+00> : vector<16x128xf32>
    %25 = tpu.matmul %23, %24, %cst_13 {dimension_numbers = #tpu.dot_dimension_numbers<[1], [0], [0], [1], [0, 0, 1, 1], [], []>} : vector<16x512xbf16>, vector<512x128xbf16>, vector<16x128xf32> -> vector<16x128xf32>
    %26 = arith.addf %4, %25 : vector<16x128xf32>
    %c0_14 = arith.constant 0 : index
    %c0_15 = arith.constant 0 : index
    %27 = vector.load %arg6[%c0_14, %c0_15] : memref<16x128xf32, #tpu.memory_space<vmem>>, vector<16x128xf32>
    tpu.vector_store %arg6[%c0_14, %c0_15], %26 {strides = array<i32>} : memref<16x128xf32, #tpu.memory_space<vmem>>, vector<16x128xf32>,
    return
  }
  func.func @transform_0(%arg0: i32) -> (i32, i32) {
    %c0_i32 = arith.constant 0 : i32
    %c0_i32_0 = arith.constant 0 : i32
    return %arg0, %c0_i32 : i32, i32
  }
  func.func @transform_1(%arg0: i32) -> (i32, i32) {
    %c0_i32 = arith.constant 0 : i32
    %c0_i32_0 = arith.constant 0 : i32
    %c0_i32_1 = arith.constant 0 : i32
    return %c0_i32, %c0_i32_0 : i32, i32
  }
  func.func @transform_2(%arg0: i32) -> (i32, i32) {
    %c0_i32 = arith.constant 0 : i32
    %c0_i32_0 = arith.constant 0 : i32
    %c0_i32_1 = arith.constant 0 : i32
    return %c0_i32, %c0_i32_0 : i32, i32
  }
  func.func @transform_3(%arg0: i32) -> (i32, i32) {
    %c0_i32 = arith.constant 0 : i32
    %c0_i32_0 = arith.constant 0 : i32
    %c0_i32_1 = arith.constant 0 : i32
    return %c0_i32, %c0_i32_0 : i32, i32
  }
  func.func @transform_4(%arg0: i32) -> (i32, i32) {
    %c0_i32 = arith.constant 0 : i32
    %c0_i32_0 = arith.constant 0 : i32
    %c0_i32_1 = arith.constant 0 : i32
    return %c0_i32, %c0_i32_0 : i32, i32
  }
  func.func @transform_5(%arg0: i32) -> (i32, i32) {
    %c0_i32 = arith.constant 0 : i32
    %c0_i32_0 = arith.constant 0 : i32
    return %arg0, %c0_i32 : i32, i32
  }
}

</mosaic_0001>

<bundles_post_ra>
// kernel: residual_add_mlp.1
= control target key start
LH: loop header
LB: loop body
LE: loop exit
PB: predicated region body
PF: predicated region fallthrough
CT: control target
= control target key end

     0   :  { %10 = vsyncpa [#allocation3], 0  ;;  %s1286_s0 = inlined_call_operand.hbm [shape: f32[16,128], index: 0, kind: input, shape index: {}]   ;;  %s1287_s1 = inlined_call_operand.hbm [shape: bf16[128,512], index: 1, kind: input, shape index: {}]   ;;  %s1288_s2 = inlined_call_operand.vmem [shape: f32[1,512], index: 2, kind: input, shape index: {}]   ;;  %s1289_s3 = inlined_call_operand.hbm [shape: bf16[512,128], index: 3, kind: input, shape index: {}]   ;;  %s1290_s4 = inlined_call_operand.vmem [shape: f32[1,128], index: 4, kind: input, shape index: {}]   ;;  %s1291_s5 = inlined_call_operand.hbm [shape: f32[16,128], index: 5, kind: output, shape index: {}]  }
   0x1   :  { %11 = vsyncpa [#allocation6], 0 }
   0x2   :  { %12 = vsyncpa [#allocation4], 0  ;;  %s1121_s18 = smov [#allocation5]   ;;  %s1027_s22 = scalar_lea.hbm %s1287_s1, 4096 }
   0x3   :  { %s30_s19 = sshll.u32 %s1121_s18, 4  ;;  %p1028_p0 = scmp.ne.s32.totalorder %s1287_s1, %s1027_s22  ;;  %s31_s19 = int_to_ptr.vmem [resolvable:$true] %s30_s19 }
   0x4   :  { %p1031_p1 = scmp.lt.u32.totalorder %s1027_s22, %s1287_s1 }
   0x6   :  { %p1033_p2 = pnand %p1031_p1, %p1028_p0 }
   0x8   :  { %1036 = shalt.err (!%p1033_p2)
}
   0x9   :  { %s1037_s27 = scalar_lea.vmem %s31_s19, 4096  ;;  %p1042_p4 = scmp.lt.s32.totalorder %s31_s19, %s31_s19 }
   0xa   :  { %p1038_p3 = scmp.ne.s32.totalorder %s31_s19, %s1037_s27  ;;  %p1043_p5 = scmp.lt.s32.totalorder %s1037_s27, %s1037_s27 }
   0xc   :  { %p1044_p6 = por %p1043_p5, %p1042_p4 }
   0xe   :  { %p1045_p7 = pnand %p1044_p6, %p1038_p3 }
  0x10   :  { %1048 = shalt.err (!%p1045_p7)
}
  0x11   :  { %s1122_s28 = smov 256   ;;  %s1123_s29 = smov 16  }
  0x12   :  { %36 = dma.hbm_to_vmem [thread:$0]  %s1287_s1, 4096, %s31_s19, [#allocation6], %s1122_s28, %s1122_s28, %s1123_s29  }
  0x13   :  { %s1124_s7 = smov [#allocation2]   ;;  %s1049_s11 = scalar_lea.hbm %s1286_s0, 256 }
  0x14   :  { %s18_s8 = sshll.u32 %s1124_s7, 4  ;;  %p1050_p8 = scmp.ne.s32.totalorder %s1286_s0, %s1049_s11  ;;  %s19_s8 = int_to_ptr.vmem [resolvable:$true] %s18_s8 }
  0x15   :  { %p1053_p9 = scmp.lt.u32.totalorder %s1049_s11, %s1286_s0 }
  0x17   :  { %p1055_p10 = pnand %p1053_p9, %p1050_p8 }
  0x19   :  { %1058 = shalt.err (!%p1055_p10)
}
  0x1a   :  { %s1059_s16 = scalar_lea.vmem %s19_s8, 256  ;;  %p1064_p12 = scmp.lt.s32.totalorder %s19_s8, %s19_s8 }
  0x1b   :  { %p1060_p11 = scmp.ne.s32.totalorder %s19_s8, %s1059_s16  ;;  %p1065_p13 = scmp.lt.s32.totalorder %s1059_s16, %s1059_s16 }
  0x1d   :  { %p1066_p0 = por %p1065_p13, %p1064_p12 }
  0x1f   :  { %p1067_p1 = pnand %p1066_p0, %p1060_p11 }
  0x21   :  { %1070 = shalt.err (!%p1067_p1)
}
  0x22   :  { %s1125_s1 = smov 128   ;;  %s1126_s17 = smov 8  }
  0x23   :  { %24 = dma.hbm_to_vmem [thread:$0]  %s1286_s0, 256, %s19_s8, [#allocation3], %s1125_s1, %s1125_s1, %s1126_s17  }
  0x24   :  { %s1127_s20 = smov [#allocation7]   ;;  %s1071_s24 = scalar_lea.hbm %s1289_s3, 4096 }
  0x25   :  { %s44_s21 = sshll.u32 %s1127_s20, 4  ;;  %p1072_p2 = scmp.ne.s32.totalorder %s1289_s3, %s1071_s24  ;;  %s45_s21 = int_to_ptr.vmem [resolvable:$true] %s44_s21 }
  0x26   :  { %p1075_p3 = scmp.lt.u32.totalorder %s1071_s24, %s1289_s3 }
  0x28   :  { %p1077_p4 = pnand %p1075_p3, %p1072_p2 }
  0x2a   :  { %1080 = shalt.err (!%p1077_p4)
}
  0x2b   :  { %s1081_s29 = scalar_lea.vmem %s45_s21, 4096  ;;  %p1086_p6 = scmp.lt.s32.totalorder %s45_s21, %s45_s21 }
  0x2c   :  { %p1082_p5 = scmp.ne.s32.totalorder %s45_s21, %s1081_s29  ;;  %p1087_p7 = scmp.lt.s32.totalorder %s1081_s29, %s1081_s29 }
  0x2e   :  { %p1088_p8 = por %p1087_p7, %p1086_p6 }
  0x30   :  { %p1089_p9 = pnand %p1088_p8, %p1082_p5 }
  0x32   :  { %1092 = shalt.err (!%p1089_p9)
}
  0x33   :  { %s1128_s0 = smov 64   ;;  %s1129_s30 = smov 4  }
  0x34   :  { %50 = dma.hbm_to_vmem [thread:$0]  %s1289_s3, 4096, %s45_s21, [#allocation6], %s1128_s0, %s1128_s0, %s1129_s30  }
  0x35   :  { %1115 = dma.done.wait [#allocation3], 256  }
  0x36   :  { %1116 = vsyncadd [#allocation3], 4294967040 }
  0x37   :  { %1117 = dma.done.wait [#allocation6], 8192  }
  0x38   :  { %1118 = vsyncadd [#allocation6], 4294959104  ;;  %v1130_v0 = vmov 0   ;;  %v931_v1 = vld [vmem:[#allocation5 + $0x4] ss:$16 sps:$4 sm:$0xff]   ;;  %v1203_v34 = vld [vmem:[#allocation2 + $0x8] sm:$0xff] }
  0x39   :  { %321 = vmatprep.mubr.bf16.mxu0 %v1130_v0  ;;  %364 = vmatprep.mubr.bf16.mxu1 %v1130_v0  ;;  %v933_v2 = vld [vmem:[#allocation5 + $0xc] ss:$16 sps:$4 sm:$0xff]   ;;  %v935_v3 = vld [vmem:[#allocation5] ss:$16 sps:$4 sm:$0xff]   ;;  %v936_v4 = vld [vmem:[#allocation5 + $0x8] ss:$16 sps:$4 sm:$0xff]  }
  0x3a   :  { %289 = vmatprep.subr.bf16.mxu0 %v931_v1  ;;  %332 = vmatprep.subr.bf16.mxu1 %v933_v2  ;;  %v937_v5 = vld [vmem:[#allocation5 + $0x24] ss:$16 sps:$4 sm:$0xff]   ;;  %v939_v6 = vld [vmem:[#allocation5 + $0x2c] ss:$16 sps:$4 sm:$0xff]   ;;  %v941_v7 = vld [vmem:[#allocation5 + $0x20] ss:$16 sps:$4 sm:$0xff]  }
  0x3b   :  { %290 = vmatpush1.bf16.msra.mxu0 %v935_v3  ;;  %333 = vmatpush1.bf16.msra.mxu1 %v936_v4  ;;  %v942_v8 = vld [vmem:[#allocation5 + $0x28] ss:$16 sps:$4 sm:$0xff]   ;;  %v943_v9 = vld [vmem:[#allocation5 + $0x44] ss:$16 sps:$4 sm:$0xff]   ;;  %v945_v10 = vld [vmem:[#allocation5 + $0x4c] ss:$16 sps:$4 sm:$0xff]   ;;  %v109_v4 = vlaneseq }
  0x3c   :  { %291 = vmatprep.subr.bf16.mxu0 %v937_v5  ;;  %334 = vmatprep.subr.bf16.mxu1 %v939_v6  ;;  %v947_v11 = vld [vmem:[#allocation5 + $0x40] ss:$16 sps:$4 sm:$0xff]   ;;  %v948_v12 = vld [vmem:[#allocation5 + $0x48] ss:$16 sps:$4 sm:$0xff]   ;;  %v949_v13 = vld [vmem:[#allocation5 + $0x64] ss:$16 sps:$4 sm:$0xff]  }
  0x3d   :  { %v951_v14 = vld [vmem:[#allocation5 + $0x6c] ss:$16 sps:$4 sm:$0xff]   ;;  %v953_v15 = vld [vmem:[#allocation5 + $0x60] ss:$16 sps:$4 sm:$0xff]   ;;  %v954_v16 = vld [vmem:[#allocation5 + $0x68] ss:$16 sps:$4 sm:$0xff]  }
  0x3e   :  { %v955_v17 = vld [vmem:[#allocation5 + $0x84] ss:$16 sps:$4 sm:$0xff]   ;;  %v957_v18 = vld [vmem:[#allocation5 + $0x8c] ss:$16 sps:$4 sm:$0xff]   ;;  %v959_v19 = vld [vmem:[#allocation5 + $0x80] ss:$16 sps:$4 sm:$0xff]  }
  0x3f   :  { %292 = vmatpush1.bf16.msra.mxu0 %v941_v7  ;;  %335 = vmatpush1.bf16.msra.mxu1 %v942_v8  ;;  %v960_v20 = vld [vmem:[#allocation5 + $0x88] ss:$16 sps:$4 sm:$0xff]   ;;  %v961_v21 = vld [vmem:[#allocation5 + $0xa4] ss:$16 sps:$4 sm:$0xff]   ;;  %v963_v22 = vld [vmem:[#allocation5 + $0xac] ss:$16 sps:$4 sm:$0xff]  }
  0x40   :  { %293 = vmatprep.subr.bf16.mxu0 %v943_v9  ;;  %336 = vmatprep.subr.bf16.mxu1 %v945_v10  ;;  %v965_v23 = vld [vmem:[#allocation5 + $0xa0] ss:$16 sps:$4 sm:$0xff]   ;;  %v966_v24 = vld [vmem:[#allocation5 + $0xa8] ss:$16 sps:$4 sm:$0xff]   ;;  %v967_v25 = vld [vmem:[#allocation5 + $0xc4] ss:$16 sps:$4 sm:$0xff]  }
  0x41   :  { %v969_v26 = vld [vmem:[#allocation5 + $0xcc] ss:$16 sps:$4 sm:$0xff]   ;;  %v971_v27 = vld [vmem:[#allocation5 + $0xc0] ss:$16 sps:$4 sm:$0xff]   ;;  %v972_v28 = vld [vmem:[#allocation5 + $0xc8] ss:$16 sps:$4 sm:$0xff]  }
  0x42   :  { %v973_v29 = vld [vmem:[#allocation5 + $0xe4] ss:$16 sps:$4 sm:$0xff]   ;;  %v975_v30 = vld [vmem:[#allocation5 + $0xec] ss:$16 sps:$4 sm:$0xff]   ;;  %v977_v31 = vld [vmem:[#allocation5 + $0xe0] ss:$16 sps:$4 sm:$0xff]  }
  0x43   :  { %294 = vmatpush1.bf16.msra.mxu0 %v947_v11  ;;  %337 = vmatpush1.bf16.msra.mxu1 %v948_v12  ;;  %v978_v32 = vld [vmem:[#allocation5 + $0xe8] ss:$16 sps:$4 sm:$0xff]   ;;  %v1201_v33 = vld [vmem:[#allocation2] sm:$0xff]  ;;  %v979_v36 = vld [vmem:[#allocation7 + $0x40] sm:$0xff]   ;;  %v110_v5 = vshrl.u32 %v109_v4, 7  ;;  %s1131_s10 = smov [#allocation8]  }
  0x44   :  { %295 = vmatprep.subr.bf16.mxu0 %v949_v13  ;;  %338 = vmatprep.subr.bf16.mxu1 %v951_v14  ;;  %v65_v35 = vpack.c.bf16 %v1203_v34, %v1201_v33  ;;  %v980_v37 = vld [vmem:[#allocation7 + $0xc0] sm:$0xff]   ;;  %v983_v40 = vld [vmem:[#allocation7 + $0x48] sm:$0xff]   ;;  %v987_v44 = vld [vmem:[#allocation7 + $0x50] sm:$0xff]   ;;  %s798_s11 = sshll.u32 %s1131_s10, 4  ;;  %s799_s11 = int_to_ptr.vmem [resolvable:$true] %s798_s11 }
  0x45   :  { %v981_v38 = vld [vmem:[#allocation7] sm:$0xff]   ;;  %v984_v41 = vld [vmem:[#allocation7 + $0xc8] sm:$0xff]   ;;  %v988_v45 = vld [vmem:[#allocation7 + $0xd0] sm:$0xff]   ;;  %v111_v6 = vsub.s32 0, %v110_v5  ;;  %v119_v7 = vsub.s32 2, %v110_v5  ;;  %v115_v9 = vsub.s32 1, %v110_v5  ;;  %p1098_p11 = scmp.lt.s32.totalorder %s799_s11, %s799_s11 }
  0x46   :  { %v982_v39 = vld [vmem:[#allocation7 + $0x80] sm:$0xff]   ;;  %v985_v42 = vld [vmem:[#allocation7 + $0x8] sm:$0xff]   ;;  %v989_v46 = vld [vmem:[#allocation7 + $0x10] sm:$0xff]   ;;  %v123_v10 = vsub.s32 3, %v110_v5 }
  0x47   :  { %296 = vmatpush1.bf16.msra.mxu0 %v953_v15  ;;  %339 = vmatpush1.bf16.msra.mxu1 %v954_v16  ;;  %v986_v43 = vld [vmem:[#allocation7 + $0x88] sm:$0xff]   ;;  %v990_v47 = vld [vmem:[#allocation7 + $0x90] sm:$0xff]   ;;  %v991_v48 = vld [vmem:[#allocation7 + $0x58] sm:$0xff]  }
  0x48   :  { %297 = vmatprep.subr.bf16.mxu0 %v955_v17  ;;  %340 = vmatprep.subr.bf16.mxu1 %v957_v18  ;;  %v992_v49 = vld [vmem:[#allocation7 + $0xd8] sm:$0xff]   ;;  %v995_v52 = vld [vmem:[#allocation7 + $0x60] sm:$0xff]   ;;  %v999_v56 = vld [vmem:[#allocation7 + $0x68] sm:$0xff]  }
  0x49   :  { %v993_v50 = vld [vmem:[#allocation7 + $0x18] sm:$0xff]   ;;  %v996_v53 = vld [vmem:[#allocation7 + $0xe0] sm:$0xff]   ;;  %v1000_v57 = vld [vmem:[#allocation7 + $0xe8] sm:$0xff]  }
  0x4a   :  { %v994_v51 = vld [vmem:[#allocation7 + $0x98] sm:$0xff]   ;;  %v997_v54 = vld [vmem:[#allocation7 + $0x20] sm:$0xff]   ;;  %v1001_v58 = vld [vmem:[#allocation7 + $0x28] sm:$0xff]  }
  0x4b   :  { %298 = vmatpush1.bf16.msra.mxu0 %v959_v19  ;;  %341 = vmatpush1.bf16.msra.mxu1 %v960_v20  ;;  %v998_v55 = vld [vmem:[#allocation7 + $0xa0] sm:$0xff]   ;;  %v1002_v59 = vld [vmem:[#allocation7 + $0xa8] sm:$0xff]   ;;  %v1003_v60 = vld [vmem:[#allocation7 + $0x70] sm:$0xff]  }
  0x4c   :  { %299 = vmatprep.subr.bf16.mxu0 %v961_v21  ;;  %342 = vmatprep.subr.bf16.mxu1 %v963_v22  ;;  %v1004_v61 = vld [vmem:[#allocation7 + $0xf0] sm:$0xff]   ;;  %v1007_v0 = vld [vmem:[#allocation7 + $0x78] sm:$0xff]  }
  0x4d   :  { %v1005_v62 = vld [vmem:[#allocation7 + $0x30] sm:$0xff]   ;;  %v1008_v1 = vld [vmem:[#allocation7 + $0xf8] sm:$0xff]  }
  0x4e   :  { %v1006_v63 = vld [vmem:[#allocation7 + $0xb0] sm:$0xff]   ;;  %v1009_v2 = vld [vmem:[#allocation7 + $0x38] sm:$0xff]  }
  0x4f   :  { %300 = vmatpush1.bf16.msra.mxu0 %v965_v23  ;;  %343 = vmatpush1.bf16.msra.mxu1 %v966_v24  ;;  %v1010_v3 = vld [vmem:[#allocation7 + $0xb8] sm:$0xff]   ;;  %v107_v8 = vld [vmem:[%s1288_s2] sm:$0xf] }
  0x50   :  { %301 = vmatprep.subr.bf16.mxu0 %v967_v25  ;;  %344 = vmatprep.subr.bf16.mxu1 %v969_v26  ;;  %v112_v11 = vrot.slane %v107_v8, %v111_v6  ;;  %v120_v12 = vrot.slane %v107_v8, %v119_v7  ;;  %v116_v13 = vrot.slane %v107_v8, %v115_v9 }
  0x51   :  { %v124_v14 = vrot.slane %v107_v8, %v123_v10 }
  0x53   :  { %302 = vmatpush1.bf16.msra.mxu0 %v971_v27  ;;  %345 = vmatpush1.bf16.msra.mxu1 %v972_v28 }
  0x54   :  { %303 = vmatprep.subr.bf16.mxu0 %v973_v29  ;;  %346 = vmatprep.subr.bf16.mxu1 %v975_v30 }
  0x57   :  { %304 = vmatpush1.bf16.msra.mxu0 %v977_v31  ;;  %347 = vmatpush1.bf16.msra.mxu1 %v978_v32 }
  0x58   :  { %876 = vmatprep.subr.bf16.mxu0 %v979_v36  ;;  %898 = vmatprep.subr.bf16.mxu1 %v980_v37 }
  0x5a   :  { %322 = vmatmul.mubr.bf16.vlgmr.msra.gmra.mrb[0].mxu0 %v65_v35  ;;  %365 = vmatmul.mubr.bf16.vlgmr.msra.gmra.mrb[0].mxu1 %v65_v35 }
  0x5b   :  { %877 = vmatpush3.bf16.msra.mxu0 %v981_v38  ;;  %899 = vmatpush3.bf16.msra.mxu1 %v982_v39 }
  0x5c   :  { %878 = vmatprep.subr.bf16.mxu0 %v983_v40  ;;  %900 = vmatprep.subr.bf16.mxu1 %v984_v41 }
  0x5f   :  { %879 = vmatpush3.bf16.msra.mxu0 %v985_v42  ;;  %901 = vmatpush3.bf16.msra.mxu1 %v986_v43 }
  0x60   :  { %880 = vmatprep.subr.bf16.mxu0 %v987_v44  ;;  %902 = vmatprep.subr.bf16.mxu1 %v988_v45 }
  0x63   :  { %881 = vmatpush3.bf16.msra.mxu0 %v989_v46  ;;  %903 = vmatpush3.bf16.msra.mxu1 %v990_v47 }
  0x64   :  { %882 = vmatprep.subr.bf16.mxu0 %v991_v48  ;;  %904 = vmatprep.subr.bf16.mxu1 %v992_v49 }
  0x67   :  { %883 = vmatpush3.bf16.msra.mxu0 %v993_v50  ;;  %905 = vmatpush3.bf16.msra.mxu1 %v994_v51 }
  0x68   :  { %884 = vmatprep.subr.bf16.mxu0 %v995_v52  ;;  %906 = vmatprep.subr.bf16.mxu1 %v996_v53 }
  0x6b   :  { %885 = vmatpush3.bf16.msra.mxu0 %v997_v54  ;;  %907 = vmatpush3.bf16.msra.mxu1 %v998_v55 }
  0x6c   :  { %886 = vmatprep.subr.bf16.mxu0 %v999_v56  ;;  %908 = vmatprep.subr.bf16.mxu1 %v1000_v57 }
  0x6f   :  { %887 = vmatpush3.bf16.msra.mxu0 %v1001_v58  ;;  %909 = vmatpush3.bf16.msra.mxu1 %v1002_v59 }
  0x70   :  { %888 = vmatprep.subr.bf16.mxu0 %v1003_v60  ;;  %910 = vmatprep.subr.bf16.mxu1 %v1004_v61 }
  0x73   :  { %889 = vmatpush3.bf16.msra.mxu0 %v1005_v62  ;;  %911 = vmatpush3.bf16.msra.mxu1 %v1006_v63 }
  0x74   :  { %890 = vmatprep.subr.bf16.mxu0 %v1007_v0  ;;  %912 = vmatprep.subr.bf16.mxu1 %v1008_v1 }
  0x77   :  { %891 = vmatpush3.bf16.msra.mxu0 %v1009_v2  ;;  %913 = vmatpush3.bf16.msra.mxu1 %v1010_v3 }
 0x12d   :  { %v323_v15 = vpop.f32.mrb[0].mxu0  ;;  %v366_v16 = vpop.f32.mrb[0].mxu1 }
 0x12e   :  { %v1210_v17 = vadd.f32 %v323_v15, %v112_v11  ;;  %v1212_v18 = vadd.f32 %v366_v16, %v120_v12  ;;  %v325_v19 = vpop.f32.mrb[1].mxu0  ;;  %v368_v20 = vpop.f32.mrb[1].mxu1 }
 0x12f   :  { %v1214_v21 = vadd.f32 %v325_v19, %v116_v13  ;;  %v1216_v22 = vadd.f32 %v368_v20, %v124_v14  ;;  %v327_v23 = vpop.f32.mrb[2].mxu0  ;;  %v370_v24 = vpop.f32.mrb[2].mxu1 }
 0x130   :  { %v375_v25 = vmul.f32 %v1210_v17, %v1210_v17  ;;  %v377_v26 = vmul.f32 %v1212_v18, %v1212_v18  ;;  %v1222_v27 = vadd.f32 %v327_v23, %v112_v11  ;;  %v1224_v28 = vadd.f32 %v370_v24, %v120_v12  ;;  %v329_v29 = vpop.f32.mrb[3].mxu0  ;;  %v372_v30 = vpop.f32.mrb[3].mxu1 }
 0x131   :  { %v376_v31 = vmul.f32 %v1214_v21, %v1214_v21  ;;  %v378_v32 = vmul.f32 %v1216_v22, %v1216_v22  ;;  %v1230_v35 = vadd.f32 %v329_v29, %v116_v13  ;;  %v1232_v36 = vadd.f32 %v372_v30, %v124_v14 }
 0x132   :  { %v383_v37 = vmul.f32 %v375_v25, %v1210_v17  ;;  %v385_v38 = vmul.f32 %v377_v26, %v1212_v18  ;;  %v379_v39 = vmul.f32 %v1222_v27, %v1222_v27  ;;  %v381_v40 = vmul.f32 %v1224_v28, %v1224_v28 }
 0x133   :  { %v384_v41 = vmul.f32 %v376_v31, %v1214_v21  ;;  %v386_v42 = vmul.f32 %v378_v32, %v1216_v22  ;;  %v380_v43 = vmul.f32 %v1230_v35, %v1230_v35  ;;  %v382_v44 = vmul.f32 %v1232_v36, %v1232_v36 }
 0x134   :  { %v391_v45 = vmul.f32 0.044715, %v383_v37  ;;  %v393_v46 = vmul.f32 0.044715, %v385_v38  ;;  %v387_v47 = vmul.f32 %v379_v39, %v1222_v27  ;;  %v389_v48 = vmul.f32 %v381_v40, %v1224_v28 }
 0x135   :  { %v392_v49 = vmul.f32 0.044715, %v384_v41  ;;  %v394_v50 = vmul.f32 0.044715, %v386_v42  ;;  %v388_v51 = vmul.f32 %v380_v43, %v1230_v35  ;;  %v390_v52 = vmul.f32 %v382_v44, %v1232_v36 }
 0x136   :  { %v399_v53 = vadd.f32 %v391_v45, %v1210_v17  ;;  %v401_v54 = vadd.f32 %v393_v46, %v1212_v18  ;;  %v395_v55 = vmul.f32 0.044715, %v387_v47  ;;  %v397_v56 = vmul.f32 0.044715, %v389_v48 }
 0x137   :  { %v400_v57 = vadd.f32 %v392_v49, %v1214_v21  ;;  %v402_v58 = vadd.f32 %v394_v50, %v1216_v22  ;;  %v396_v59 = vmul.f32 0.044715, %v388_v51  ;;  %v398_v60 = vmul.f32 0.044715, %v390_v52 }
 0x138   :  { %v407_v61 = vmul.f32 0.7978846, %v399_v53  ;;  %v409_v62 = vmul.f32 0.7978846, %v401_v54  ;;  %v403_v63 = vadd.f32 %v395_v55, %v1222_v27  ;;  %v405_v0 = vadd.f32 %v397_v56, %v1224_v28 }
 0x139   :  { %v408_v1 = vmul.f32 0.7978846, %v400_v57  ;;  %v410_v2 = vmul.f32 0.7978846, %v402_v58  ;;  %v404_v3 = vadd.f32 %v396_v59, %v1230_v35  ;;  %v406_v4 = vadd.f32 %v398_v60, %v1232_v36 }
 0x13a   :  { %1011 = vtanh.f32 %v407_v61  ;;  %v411_v5 = vmul.f32 0.7978846, %v403_v63  ;;  %v413_v6 = vmul.f32 0.7978846, %v405_v0 }
 0x13b   :  { %1013 = vtanh.f32 %v409_v62  ;;  %v412_v7 = vmul.f32 0.7978846, %v404_v3  ;;  %v414_v8 = vmul.f32 0.7978846, %v406_v4 }
 0x13c   :  { %1015 = vtanh.f32 %v408_v1 }
 0x13d   :  { %1017 = vtanh.f32 %v410_v2 }
 0x13e   :  { %1019 = vtanh.f32 %v411_v5 }
 0x13f   :  { %1021 = vtanh.f32 %v413_v6 }
 0x140   :  { %1023 = vtanh.f32 %v412_v7 }
 0x141   :  { %1025 = vtanh.f32 %v414_v8 }
 0x144   :  { %v1012_v9 = vpop.eup %1011 }
 0x145   :  { %v1014_v10 = vpop.eup %1013  ;;  %v423_v11 = vadd.f32 1.0, %v1012_v9 }
 0x146   :  { %v1016_v12 = vpop.eup %1015  ;;  %v425_v13 = vadd.f32 1.0, %v1014_v10 }
 0x147   :  { %v1018_v14 = vpop.eup %1017  ;;  %v424_v15 = vadd.f32 1.0, %v1016_v12  ;;  %v431_v23 = vmul.f32 0.5, %v423_v11 }
 0x148   :  { %v1020_v16 = vpop.eup %1019  ;;  %v426_v19 = vadd.f32 1.0, %v1018_v14  ;;  %v433_v26 = vmul.f32 0.5, %v425_v13 }
 0x149   :  { %v1022_v20 = vpop.eup %1021  ;;  %v427_v24 = vadd.f32 1.0, %v1020_v16  ;;  %v432_v37 = vmul.f32 0.5, %v424_v15  ;;  %v439_v41 = vmul.f32 %v431_v23, %v1210_v17 }
 0x14a   :  { %v1024_v25 = vpop.eup %1023  ;;  %v429_v29 = vadd.f32 1.0, %v1022_v20  ;;  %v434_v40 = vmul.f32 0.5, %v426_v19  ;;  %v441_v44 = vmul.f32 %v433_v26, %v1212_v18  ;;  %v811_v18 = vld [vmem:[%s1290_s4] ss:$0 sm:$0xff]  ;;  %s1093_s4 = scalar_lea.vmem %s799_s11, 256 }
 0x14b   :  { %v1026_v30 = vpop.eup %1025  ;;  %v435_v31 = vmul.f32 0.5, %v427_v24  ;;  %v428_v32 = vadd.f32 1.0, %v1024_v25  ;;  %v440_v47 = vmul.f32 %v432_v37, %v1214_v21  ;;  %v74_v60 = vadd.f32 %v811_v18, %v1203_v34  ;;  %p1094_p10 = scmp.ne.s32.totalorder %s799_s11, %s1093_s4  ;;  %p1099_p12 = scmp.lt.s32.totalorder %s1093_s4, %s1093_s4 }
 0x14c   :  { %v437_v38 = vmul.f32 0.5, %v429_v29  ;;  %v430_v39 = vadd.f32 1.0, %v1026_v30  ;;  %v442_v50 = vmul.f32 %v434_v40, %v1216_v22  ;;  %v73_v22 = vadd.f32 %v811_v18, %v1201_v33 }
 0x14d   :  { %v443_v42 = vmul.f32 %v435_v31, %v1222_v27  ;;  %v436_v43 = vmul.f32 0.5, %v428_v32  ;;  %p1100_p13 = por %p1099_p12, %p1098_p11 }
 0x14e   :  { %v445_v45 = vmul.f32 %v437_v38, %v1224_v28  ;;  %v438_v46 = vmul.f32 0.5, %v430_v39 }
 0x14f   :  { %v444_v48 = vmul.f32 %v436_v43, %v1230_v35  ;;  %v447_v49 = vpack.c.bf16 %v443_v42, %v439_v41  ;;  %p1101_p0 = pnand %p1100_p13, %p1094_p10 }
 0x150   :  { %v446_v51 = vmul.f32 %v438_v46, %v1232_v36  ;;  %v449_v52 = vpack.c.bf16 %v445_v45, %v441_v44 }
 0x151   :  { %v448_v53 = vpack.c.bf16 %v444_v48, %v440_v47 }
 0x152   :  { %v450_v17 = vpack.c.bf16 %v446_v51, %v442_v50 }
 0x153   :  { %739 = vmatprep.mubr.bf16.mxu0 %v448_v53 }
 0x154   :  { %780 = vmatprep.mubr.bf16.mxu1 %v450_v17  ;;  %740 = vmatmul.mubr.bf16.vlgmr.msra.gmra.mrb[4].mxu0 %v447_v49 }
 0x155   :  { %781 = vmatmul.mubr.bf16.vlgmr.msra.gmra.mrb[4].mxu1 %v449_v52 }
 0x227   :  { %v892_v27 = vpop.f32.mrb[4].mxu0 }
 0x228   :  { %v914_v21 = vpop.f32.mrb[4].mxu1  ;;  %v893_v28 = vpop.f32.mrb[5].mxu0 }
 0x229   :  { %v894_v35 = vadd.f32 %v893_v28, %v892_v27  ;;  %v915_v54 = vpop.f32.mrb[5].mxu1  ;;  %v895_v55 = vpop.f32.mrb[6].mxu0 }
 0x22a   :  { %v916_v36 = vadd.f32 %v915_v54, %v914_v21  ;;  %v917_v56 = vpop.f32.mrb[6].mxu1  ;;  %v896_v57 = vpop.f32.mrb[7].mxu0 }
 0x22b   :  { %v897_v58 = vadd.f32 %v896_v57, %v895_v55  ;;  %v918_v59 = vpop.f32.mrb[7].mxu1 }
 0x22c   :  { %v783_v61 = vadd.f32 %v916_v36, %v894_v35  ;;  %v919_v62 = vadd.f32 %v918_v59, %v917_v56 }
 0x22e   :  { %v789_v63 = vadd.f32 %v783_v61, %v73_v22  ;;  %v786_v0 = vadd.f32 %v919_v62, %v897_v58 }
 0x230   :  { %791 = vst [vmem:[#allocation8] sm:$0xff] %v789_v63  ;;  %v790_v1 = vadd.f32 %v786_v0, %v74_v60 }
 0x232   :  { %792 = vst [vmem:[#allocation8 + $0x8] sm:$0xff] %v790_v1 }
 0x233   :  { %1104 = shalt.err (!%p1101_p0)
}
 0x234   :  { %s1105_s14 = scalar_lea.hbm %s1291_s5, 256 }
 0x235   :  { %p1106_p1 = scmp.ne.s32.totalorder %s1291_s5, %s1105_s14  ;;  %p1109_p2 = scmp.lt.u32.totalorder %s1105_s14, %s1291_s5 }
 0x237   :  { %p1111_p3 = pnand %p1109_p2, %p1106_p1 }
 0x239   :  { %1114 = shalt.err (!%p1111_p3)
}
 0x23a   :  { %804 = dma.vmem_to_hbm [thread:$0]  %s799_s11, 256, %s1291_s5, [#allocation4], %s1125_s1, %s1125_s1, %s1126_s17  }
 0x23b   :  { %1119 = dma.done.wait [#allocation4], 256  }
 0x23c   :  { %1120 = vsyncadd [#allocation4], 4294967040 }
 0x23d   :  { %808 = vsyncpa [#allocation3], 1 }
 0x23e   :  { %809 = vsyncpa [#allocation6], 1 }
 0x23f   :  { %810 = vsyncpa [#allocation4], 1 }

// kernel: residual_add_mlp.1
= control target key start
LH: loop header
LB: loop body
LE: loop exit
PB: predicated region body
PF: predicated region fallthrough
CT: control target
= control target key end

     0   :  { %10 = vsyncpa [#allocation3], 0  ;;  %s1286_s0 = inlined_call_operand.hbm [shape: f32[16,128], index: 0, kind: input, shape index: {}]   ;;  %s1287_s1 = inlined_call_operand.hbm [shape: bf16[128,512], index: 1, kind: input, shape index: {}]   ;;  %s1288_s2 = inlined_call_operand.vmem [shape: f32[1,512], index: 2, kind: input, shape index: {}]   ;;  %s1289_s3 = inlined_call_operand.hbm [shape: bf16[512,128], index: 3, kind: input, shape index: {}]   ;;  %s1290_s4 = inlined_call_operand.vmem [shape: f32[1,128], index: 4, kind: input, shape index: {}]   ;;  %s1291_s5 = inlined_call_operand.hbm [shape: f32[16,128], index: 5, kind: output, shape index: {}]  }
   0x1   :  { %11 = vsyncpa [#allocation6], 0 }
   0x2   :  { %12 = vsyncpa [#allocation4], 0  ;;  %s1121_s18 = smov [#allocation5]   ;;  %s1027_s22 = scalar_lea.hbm %s1287_s1, 4096 }
   0x3   :  { %s30_s19 = sshll.u32 %s1121_s18, 4  ;;  %p1028_p0 = scmp.ne.s32.totalorder %s1287_s1, %s1027_s22  ;;  %s31_s19 = int_to_ptr.vmem [resolvable:$true] %s30_s19 }
   0x4   :  { %p1031_p1 = scmp.lt.u32.totalorder %s1027_s22, %s1287_s1 }
   0x6   :  { %p1033_p2 = pnand %p1031_p1, %p1028_p0 }
   0x8   :  { %1036 = shalt.err (!%p1033_p2)
}
   0x9   :  { %s1037_s27 = scalar_lea.vmem %s31_s19, 4096  ;;  %p1042_p4 = scmp.lt.s32.totalorder %s31_s19, %s31_s19 }
   0xa   :  { %p1038_p3 = scmp.ne.s32.totalorder %s31_s19, %s1037_s27  ;;  %p1043_p5 = scmp.lt.s32.totalorder %s1037_s27, %s1037_s27 }
   0xc   :  { %p1044_p6 = por %p1043_p5, %p1042_p4 }
   0xe   :  { %p1045_p7 = pnand %p1044_p6, %p1038_p3 }
  0x10   :  { %1048 = shalt.err (!%p1045_p7)
}
  0x11   :  { %s1122_s28 = smov 256   ;;  %s1123_s29 = smov 16  }
  0x12   :  { %36 = dma.hbm_to_vmem [thread:$0]  %s1287_s1, 4096, %s31_s19, [#allocation6], %s1122_s28, %s1122_s28, %s1123_s29  }
  0x13   :  { %s1124_s7 = smov [#allocation2]   ;;  %s1049_s11 = scalar_lea.hbm %s1286_s0, 256 }
  0x14   :  { %s18_s8 = sshll.u32 %s1124_s7, 4  ;;  %p1050_p8 = scmp.ne.s32.totalorder %s1286_s0, %s1049_s11  ;;  %s19_s8 = int_to_ptr.vmem [resolvable:$true] %s18_s8 }
  0x15   :  { %p1053_p9 = scmp.lt.u32.totalorder %s1049_s11, %s1286_s0 }
  0x17   :  { %p1055_p10 = pnand %p1053_p9, %p1050_p8 }
  0x19   :  { %1058 = shalt.err (!%p1055_p10)
}
  0x1a   :  { %s1059_s16 = scalar_lea.vmem %s19_s8, 256  ;;  %p1064_p12 = scmp.lt.s32.totalorder %s19_s8, %s19_s8 }
  0x1b   :  { %p1060_p11 = scmp.ne.s32.totalorder %s19_s8, %s1059_s16  ;;  %p1065_p13 = scmp.lt.s32.totalorder %s1059_s16, %s1059_s16 }
  0x1d   :  { %p1066_p0 = por %p1065_p13, %p1064_p12 }
  0x1f   :  { %p1067_p1 = pnand %p1066_p0, %p1060_p11 }
  0x21   :  { %1070 = shalt.err (!%p1067_p1)
}
  0x22   :  { %s1125_s1 = smov 128   ;;  %s1126_s17 = smov 8  }
  0x23   :  { %24 = dma.hbm_to_vmem [thread:$0]  %s1286_s0, 256, %s19_s8, [#allocation3], %s1125_s1, %s1125_s1, %s1126_s17  }
  0x24   :  { %s1127_s20 = smov [#allocation7]   ;;  %s1071_s24 = scalar_lea.hbm %s1289_s3, 4096 }
  0x25   :  { %s44_s21 = sshll.u32 %s1127_s20, 4  ;;  %p1072_p2 = scmp.ne.s32.totalorder %s1289_s3, %s1071_s24  ;;  %s45_s21 = int_to_ptr.vmem [resolvable:$true] %s44_s21 }
  0x26   :  { %p1075_p3 = scmp.lt.u32.totalorder %s1071_s24, %s1289_s3 }
  0x28   :  { %p1077_p4 = pnand %p1075_p3, %p1072_p2 }
  0x2a   :  { %1080 = shalt.err (!%p1077_p4)
}
  0x2b   :  { %s1081_s29 = scalar_lea.vmem %s45_s21, 4096  ;;  %p1086_p6 = scmp.lt.s32.totalorder %s45_s21, %s45_s21 }
  0x2c   :  { %p1082_p5 = scmp.ne.s32.totalorder %s45_s21, %s1081_s29  ;;  %p1087_p7 = scmp.lt.s32.totalorder %s1081_s29, %s1081_s29 }
  0x2e   :  { %p1088_p8 = por %p1087_p7, %p1086_p6 }
  0x30   :  { %p1089_p9 = pnand %p1088_p8, %p1082_p5 }
  0x32   :  { %1092 = shalt.err (!%p1089_p9)
}
  0x33   :  { %s1128_s0 = smov 64   ;;  %s1129_s30 = smov 4  }
  0x34   :  { %50 = dma.hbm_to_vmem [thread:$0]  %s1289_s3, 4096, %s45_s21, [#allocation6], %s1128_s0, %s1128_s0, %s1129_s30  }
  0x35   :  { %1115 = dma.done.wait [#allocation3], 256  }
  0x36   :  { %1116 = vsyncadd [#allocation3], 4294967040 }
  0x37   :  { %1117 = dma.done.wait [#allocation6], 8192  }
  0x38   :  { %1118 = vsyncadd [#allocation6], 4294959104  ;;  %v1130_v0 = vmov 0   ;;  %v931_v1 = vld [vmem:[#allocation5 + $0x4] ss:$16 sps:$4 sm:$0xff]   ;;  %v1203_v34 = vld [vmem:[#allocation2 + $0x8] sm:$0xff] }
  0x39   :  { %321 = vmatprep.mubr.bf16.mxu0 %v1130_v0  ;;  %364 = vmatprep.mubr.bf16.mxu1 %v1130_v0  ;;  %v933_v2 = vld [vmem:[#allocation5 + $0xc] ss:$16 sps:$4 sm:$0xff]   ;;  %v935_v3 = vld [vmem:[#allocation5] ss:$16 sps:$4 sm:$0xff]   ;;  %v936_v4 = vld [vmem:[#allocation5 + $0x8] ss:$16 sps:$4 sm:$0xff]  }
  0x3a   :  { %289 = vmatprep.subr.bf16.mxu0 %v931_v1  ;;  %332 = vmatprep.subr.bf16.mxu1 %v933_v2  ;;  %v937_v5 = vld [vmem:[#allocation5 + $0x24] ss:$16 sps:$4 sm:$0xff]   ;;  %v939_v6 = vld [vmem:[#allocation5 + $0x2c] ss:$16 sps:$4 sm:$0xff]   ;;  %v941_v7 = vld [vmem:[#allocation5 + $0x20] ss:$16 sps:$4 sm:$0xff]  }
  0x3b   :  { %290 = vmatpush1.bf16.msra.mxu0 %v935_v3  ;;  %333 = vmatpush1.bf16.msra.mxu1 %v936_v4  ;;  %v942_v8 = vld [vmem:[#allocation5 + $0x28] ss:$16 sps:$4 sm:$0xff]   ;;  %v943_v9 = vld [vmem:[#allocation5 + $0x44] ss:$16 sps:$4 sm:$0xff]   ;;  %v945_v10 = vld [vmem:[#allocation5 + $0x4c] ss:$16 sps:$4 sm:$0xff]   ;;  %v109_v4 = vlaneseq }
  0x3c   :  { %291 = vmatprep.subr.bf16.mxu0 %v937_v5  ;;  %334 = vmatprep.subr.bf16.mxu1 %v939_v6  ;;  %v947_v11 = vld [vmem:[#allocation5 + $0x40] ss:$16 sps:$4 sm:$0xff]   ;;  %v948_v12 = vld [vmem:[#allocation5 + $0x48] ss:$16 sps:$4 sm:$0xff]   ;;  %v949_v13 = vld [vmem:[#allocation5 + $0x64] ss:$16 sps:$4 sm:$0xff]  }
  0x3d   :  { %v951_v14 = vld [vmem:[#allocation5 + $0x6c] ss:$16 sps:$4 sm:$0xff]   ;;  %v953_v15 = vld [vmem:[#allocation5 + $0x60] ss:$16 sps:$4 sm:$0xff]   ;;  %v954_v16 = vld [vmem:[#allocation5 + $0x68] ss:$16 sps:$4 sm:$0xff]  }
  0x3e   :  { %v955_v17 = vld [vmem:[#allocation5 + $0x84] ss:$16 sps:$4 sm:$0xff]   ;;  %v957_v18 = vld [vmem:[#allocation5 + $0x8c] ss:$16 sps:$4 sm:$0xff]   ;;  %v959_v19 = vld [vmem:[#allocation5 + $0x80] ss:$16 sps:$4 sm:$0xff]  }
  0x3f   :  { %292 = vmatpush1.bf16.msra.mxu0 %v941_v7  ;;  %335 = vmatpush1.bf16.msra.mxu1 %v942_v8  ;;  %v960_v20 = vld [vmem:[#allocation5 + $0x88] ss:$16 sps:$4 sm:$0xff]   ;;  %v961_v21 = vld [vmem:[#allocation5 + $0xa4] ss:$16 sps:$4 sm:$0xff]   ;;  %v963_v22 = vld [vmem:[#allocation5 + $0xac] ss:$16 sps:$4 sm:$0xff]  }
  0x40   :  { %293 = vmatprep.subr.bf16.mxu0 %v943_v9  ;;  %336 = vmatprep.subr.bf16.mxu1 %v945_v10  ;;  %v965_v23 = vld [vmem:[#allocation5 + $0xa0] ss:$16 sps:$4 sm:$0xff]   ;;  %v966_v24 = vld [vmem:[#allocation5 + $0xa8] ss:$16 sps:$4 sm:$0xff]   ;;  %v967_v25 = vld [vmem:[#allocation5 + $0xc4] ss:$16 sps:$4 sm:$0xff]  }
  0x41   :  { %v969_v26 = vld [vmem:[#allocation5 + $0xcc] ss:$16 sps:$4 sm:$0xff]   ;;  %v971_v27 = vld [vmem:[#allocation5 + $0xc0] ss:$16 sps:$4 sm:$0xff]   ;;  %v972_v28 = vld [vmem:[#allocation5 + $0xc8] ss:$16 sps:$4 sm:$0xff]  }
  0x42   :  { %v973_v29 = vld [vmem:[#allocation5 + $0xe4] ss:$16 sps:$4 sm:$0xff]   ;;  %v975_v30 = vld [vmem:[#allocation5 + $0xec] ss:$16 sps:$4 sm:$0xff]   ;;  %v977_v31 = vld [vmem:[#allocation5 + $0xe0] ss:$16 sps:$4 sm:$0xff]  }
  0x43   :  { %294 = vmatpush1.bf16.msra.mxu0 %v947_v11  ;;  %337 = vmatpush1.bf16.msra.mxu1 %v948_v12  ;;  %v978_v32 = vld [vmem:[#allocation5 + $0xe8] ss:$16 sps:$4 sm:$0xff]   ;;  %v1201_v33 = vld [vmem:[#allocation2] sm:$0xff]  ;;  %v979_v36 = vld [vmem:[#allocation7 + $0x40] sm:$0xff]   ;;  %v110_v5 = vshrl.u32 %v109_v4, 7  ;;  %s1131_s10 = smov [#allocation8]  }
  0x44   :  { %295 = vmatprep.subr.bf16.mxu0 %v949_v13  ;;  %338 = vmatprep.subr.bf16.mxu1 %v951_v14  ;;  %v65_v35 = vpack.c.bf16 %v1203_v34, %v1201_v33  ;;  %v980_v37 = vld [vmem:[#allocation7 + $0xc0] sm:$0xff]   ;;  %v983_v40 = vld [vmem:[#allocation7 + $0x48] sm:$0xff]   ;;  %v987_v44 = vld [vmem:[#allocation7 + $0x50] sm:$0xff]   ;;  %s798_s11 = sshll.u32 %s1131_s10, 4  ;;  %s799_s11 = int_to_ptr.vmem [resolvable:$true] %s798_s11 }
  0x45   :  { %v981_v38 = vld [vmem:[#allocation7] sm:$0xff]   ;;  %v984_v41 = vld [vmem:[#allocation7 + $0xc8] sm:$0xff]   ;;  %v988_v45 = vld [vmem:[#allocation7 + $0xd0] sm:$0xff]   ;;  %v111_v6 = vsub.s32 0, %v110_v5  ;;  %v119_v7 = vsub.s32 2, %v110_v5  ;;  %v115_v9 = vsub.s32 1, %v110_v5  ;;  %p1098_p11 = scmp.lt.s32.totalorder %s799_s11, %s799_s11 }
  0x46   :  { %v982_v39 = vld [vmem:[#allocation7 + $0x80] sm:$0xff]   ;;  %v985_v42 = vld [vmem:[#allocation7 + $0x8] sm:$0xff]   ;;  %v989_v46 = vld [vmem:[#allocation7 + $0x10] sm:$0xff]   ;;  %v123_v10 = vsub.s32 3, %v110_v5 }
  0x47   :  { %296 = vmatpush1.bf16.msra.mxu0 %v953_v15  ;;  %339 = vmatpush1.bf16.msra.mxu1 %v954_v16  ;;  %v986_v43 = vld [vmem:[#allocation7 + $0x88] sm:$0xff]   ;;  %v990_v47 = vld [vmem:[#allocation7 + $0x90] sm:$0xff]   ;;  %v991_v48 = vld [vmem:[#allocation7 + $0x58] sm:$0xff]  }
  0x48   :  { %297 = vmatprep.subr.bf16.mxu0 %v955_v17  ;;  %340 = vmatprep.subr.bf16.mxu1 %v957_v18  ;;  %v992_v49 = vld [vmem:[#allocation7 + $0xd8] sm:$0xff]   ;;  %v995_v52 = vld [vmem:[#allocation7 + $0x60] sm:$0xff]   ;;  %v999_v56 = vld [vmem:[#allocation7 + $0x68] sm:$0xff]  }
  0x49   :  { %v993_v50 = vld [vmem:[#allocation7 + $0x18] sm:$0xff]   ;;  %v996_v53 = vld [vmem:[#allocation7 + $0xe0] sm:$0xff]   ;;  %v1000_v57 = vld [vmem:[#allocation7 + $0xe8] sm:$0xff]  }
  0x4a   :  { %v994_v51 = vld [vmem:[#allocation7 + $0x98] sm:$0xff]   ;;  %v997_v54 = vld [vmem:[#allocation7 + $0x20] sm:$0xff]   ;;  %v1001_v58 = vld [vmem:[#allocation7 + $0x28] sm:$0xff]  }
  0x4b   :  { %298 = vmatpush1.bf16.msra.mxu0 %v959_v19  ;;  %341 = vmatpush1.bf16.msra.mxu1 %v960_v20  ;;  %v998_v55 = vld [vmem:[#allocation7 + $0xa0] sm:$0xff]   ;;  %v1002_v59 = vld [vmem:[#allocation7 + $0xa8] sm:$0xff]   ;;  %v1003_v60 = vld [vmem:[#allocation7 + $0x70] sm:$0xff]  }
  0x4c   :  { %299 = vmatprep.subr.bf16.mxu0 %v961_v21  ;;  %342 = vmatprep.subr.bf16.mxu1 %v963_v22  ;;  %v1004_v61 = vld [vmem:[#allocation7 + $0xf0] sm:$0xff]   ;;  %v1007_v0 = vld [vmem:[#allocation7 + $0x78] sm:$0xff]  }
  0x4d   :  { %v1005_v62 = vld [vmem:[#allocation7 + $0x30] sm:$0xff]   ;;  %v1008_v1 = vld [vmem:[#allocation7 + $0xf8] sm:$0xff]  }
  0x4e   :  { %v1006_v63 = vld [vmem:[#allocation7 + $0xb0] sm:$0xff]   ;;  %v1009_v2 = vld [vmem:[#allocation7 + $0x38] sm:$0xff]  }
  0x4f   :  { %300 = vmatpush1.bf16.msra.mxu0 %v965_v23  ;;  %343 = vmatpush1.bf16.msra.mxu1 %v966_v24  ;;  %v1010_v3 = vld [vmem:[#allocation7 + $0xb8] sm:$0xff]   ;;  %v107_v8 = vld [vmem:[%s1288_s2] sm:$0xf] }
  0x50   :  { %301 = vmatprep.subr.bf16.mxu0 %v967_v25  ;;  %344 = vmatprep.subr.bf16.mxu1 %v969_v26  ;;  %v112_v11 = vrot.slane %v107_v8, %v111_v6  ;;  %v120_v12 = vrot.slane %v107_v8, %v119_v7  ;;  %v116_v13 = vrot.slane %v107_v8, %v115_v9 }
  0x51   :  { %v124_v14 = vrot.slane %v107_v8, %v123_v10 }
  0x53   :  { %302 = vmatpush1.bf16.msra.mxu0 %v971_v27  ;;  %345 = vmatpush1.bf16.msra.mxu1 %v972_v28 }
  0x54   :  { %303 = vmatprep.subr.bf16.mxu0 %v973_v29  ;;  %346 = vmatprep.subr.bf16.mxu1 %v975_v30 }
  0x57   :  { %304 = vmatpush1.bf16.msra.mxu0 %v977_v31  ;;  %347 = vmatpush1.bf16.msra.mxu1 %v978_v32 }
  0x58   :  { %876 = vmatprep.subr.bf16.mxu0 %v979_v36  ;;  %898 = vmatprep.subr.bf16.mxu1 %v980_v37 }
  0x5a   :  { %322 = vmatmul.mubr.bf16.vlgmr.msra.gmra.mrb[0].mxu0 %v65_v35  ;;  %365 = vmatmul.mubr.bf16.vlgmr.msra.gmra.mrb[0].mxu1 %v65_v35 }
  0x5b   :  { %877 = vmatpush3.bf16.msra.mxu0 %v981_v38  ;;  %899 = vmatpush3.bf16.msra.mxu1 %v982_v39 }
  0x5c   :  { %878 = vmatprep.subr.bf16.mxu0 %v983_v40  ;;  %900 = vmatprep.subr.bf16.mxu1 %v984_v41 }
  0x5f   :  { %879 = vmatpush3.bf16.msra.mxu0 %v985_v42  ;;  %901 = vmatpush3.bf16.msra.mxu1 %v986_v43 }
  0x60   :  { %880 = vmatprep.subr.bf16.mxu0 %v987_v44  ;;  %902 = vmatprep.subr.bf16.mxu1 %v988_v45 }
  0x63   :  { %881 = vmatpush3.bf16.msra.mxu0 %v989_v46  ;;  %903 = vmatpush3.bf16.msra.mxu1 %v990_v47 }
  0x64   :  { %882 = vmatprep.subr.bf16.mxu0 %v991_v48  ;;  %904 = vmatprep.subr.bf16.mxu1 %v992_v49 }
  0x67   :  { %883 = vmatpush3.bf16.msra.mxu0 %v993_v50  ;;  %905 = vmatpush3.bf16.msra.mxu1 %v994_v51 }
  0x68   :  { %884 = vmatprep.subr.bf16.mxu0 %v995_v52  ;;  %906 = vmatprep.subr.bf16.mxu1 %v996_v53 }
  0x6b   :  { %885 = vmatpush3.bf16.msra.mxu0 %v997_v54  ;;  %907 = vmatpush3.bf16.msra.mxu1 %v998_v55 }
  0x6c   :  { %886 = vmatprep.subr.bf16.mxu0 %v999_v56  ;;  %908 = vmatprep.subr.bf16.mxu1 %v1000_v57 }
  0x6f   :  { %887 = vmatpush3.bf16.msra.mxu0 %v1001_v58  ;;  %909 = vmatpush3.bf16.msra.mxu1 %v1002_v59 }
  0x70   :  { %888 = vmatprep.subr.bf16.mxu0 %v1003_v60  ;;  %910 = vmatprep.subr.bf16.mxu1 %v1004_v61 }
  0x73   :  { %889 = vmatpush3.bf16.msra.mxu0 %v1005_v62  ;;  %911 = vmatpush3.bf16.msra.mxu1 %v1006_v63 }
  0x74   :  { %890 = vmatprep.subr.bf16.mxu0 %v1007_v0  ;;  %912 = vmatprep.subr.bf16.mxu1 %v1008_v1 }
  0x77   :  { %891 = vmatpush3.bf16.msra.mxu0 %v1009_v2  ;;  %913 = vmatpush3.bf16.msra.mxu1 %v1010_v3 }
 0x12d   :  { %v323_v15 = vpop.f32.mrb[0].mxu0  ;;  %v366_v16 = vpop.f32.mrb[0].mxu1 }
 0x12e   :  { %v1210_v17 = vadd.f32 %v323_v15, %v112_v11  ;;  %v1212_v18 = vadd.f32 %v366_v16, %v120_v12  ;;  %v325_v19 = vpop.f32.mrb[1].mxu0  ;;  %v368_v20 = vpop.f32.mrb[1].mxu1 }
 0x12f   :  { %v1214_v21 = vadd.f32 %v325_v19, %v116_v13  ;;  %v1216_v22 = vadd.f32 %v368_v20, %v124_v14  ;;  %v327_v23 = vpop.f32.mrb[2].mxu0  ;;  %v370_v24 = vpop.f32.mrb[2].mxu1 }
 0x130   :  { %v375_v25 = vmul.f32 %v1210_v17, %v1210_v17  ;;  %v377_v26 = vmul.f32 %v1212_v18, %v1212_v18  ;;  %v1222_v27 = vadd.f32 %v327_v23, %v112_v11  ;;  %v1224_v28 = vadd.f32 %v370_v24, %v120_v12  ;;  %v329_v29 = vpop.f32.mrb[3].mxu0  ;;  %v372_v30 = vpop.f32.mrb[3].mxu1 }
 0x131   :  { %v376_v31 = vmul.f32 %v1214_v21, %v1214_v21  ;;  %v378_v32 = vmul.f32 %v1216_v22, %v1216_v22  ;;  %v1230_v35 = vadd.f32 %v329_v29, %v116_v13  ;;  %v1232_v36 = vadd.f32 %v372_v30, %v124_v14 }
 0x132   :  { %v383_v37 = vmul.f32 %v375_v25, %v1210_v17  ;;  %v385_v38 = vmul.f32 %v377_v26, %v1212_v18  ;;  %v379_v39 = vmul.f32 %v1222_v27, %v1222_v27  ;;  %v381_v40 = vmul.f32 %v1224_v28, %v1224_v28 }
 0x133   :  { %v384_v41 = vmul.f32 %v376_v31, %v1214_v21  ;;  %v386_v42 = vmul.f32 %v378_v32, %v1216_v22  ;;  %v380_v43 = vmul.f32 %v1230_v35, %v1230_v35  ;;  %v382_v44 = vmul.f32 %v1232_v36, %v1232_v36 }
 0x134   :  { %v391_v45 = vmul.f32 0.044715, %v383_v37  ;;  %v393_v46 = vmul.f32 0.044715, %v385_v38  ;;  %v387_v47 = vmul.f32 %v379_v39, %v1222_v27  ;;  %v389_v48 = vmul.f32 %v381_v40, %v1224_v28 }
 0x135   :  { %v392_v49 = vmul.f32 0.044715, %v384_v41  ;;  %v394_v50 = vmul.f32 0.044715, %v386_v42  ;;  %v388_v51 = vmul.f32 %v380_v43, %v1230_v35  ;;  %v390_v52 = vmul.f32 %v382_v44, %v1232_v36 }
 0x136   :  { %v399_v53 = vadd.f32 %v391_v45, %v1210_v17  ;;  %v401_v54 = vadd.f32 %v393_v46, %v1212_v18  ;;  %v395_v55 = vmul.f32 0.044715, %v387_v47  ;;  %v397_v56 = vmul.f32 0.044715, %v389_v48 }
 0x137   :  { %v400_v57 = vadd.f32 %v392_v49, %v1214_v21  ;;  %v402_v58 = vadd.f32 %v394_v50, %v1216_v22  ;;  %v396_v59 = vmul.f32 0.044715, %v388_v51  ;;  %v398_v60 = vmul.f32 0.044715, %v390_v52 }
 0x138   :  { %v407_v61 = vmul.f32 0.7978846, %v399_v53  ;;  %v409_v62 = vmul.f32 0.7978846, %v401_v54  ;;  %v403_v63 = vadd.f32 %v395_v55, %v1222_v27  ;;  %v405_v0 = vadd.f32 %v397_v56, %v1224_v28 }
 0x139   :  { %v408_v1 = vmul.f32 0.7978846, %v400_v57  ;;  %v410_v2 = vmul.f32 0.7978846, %v402_v58  ;;  %v404_v3 = vadd.f32 %v396_v59, %v1230_v35  ;;  %v406_v4 = vadd.f32 %v398_v60, %v1232_v36 }
 0x13a   :  { %1011 = vtanh.f32 %v407_v61  ;;  %v411_v5 = vmul.f32 0.7978846, %v403_v63  ;;  %v413_v6 = vmul.f32 0.7978846, %v405_v0 }
 0x13b   :  { %1013 = vtanh.f32 %v409_v62  ;;  %v412_v7 = vmul.f32 0.7978846, %v404_v3  ;;  %v414_v8 = vmul.f32 0.7978846, %v406_v4 }
 0x13c   :  { %1015 = vtanh.f32 %v408_v1 }
 0x13d   :  { %1017 = vtanh.f32 %v410_v2 }
 0x13e   :  { %1019 = vtanh.f32 %v411_v5 }
 0x13f   :  { %1021 = vtanh.f32 %v413_v6 }
 0x140   :  { %1023 = vtanh.f32 %v412_v7 }
 0x141   :  { %1025 = vtanh.f32 %v414_v8 }
 0x144   :  { %v1012_v9 = vpop.eup %1011 }
 0x145   :  { %v1014_v10 = vpop.eup %1013  ;;  %v423_v11 = vadd.f32 1.0, %v1012_v9 }
 0x146   :  { %v1016_v12 = vpop.eup %1015  ;;  %v425_v13 = vadd.f32 1.0, %v1014_v10 }
 0x147   :  { %v1018_v14 = vpop.eup %1017  ;;  %v424_v15 = vadd.f32 1.0, %v1016_v12  ;;  %v431_v23 = vmul.f32 0.5, %v423_v11 }
 0x148   :  { %v1020_v16 = vpop.eup %1019  ;;  %v426_v19 = vadd.f32 1.0, %v1018_v14  ;;  %v433_v26 = vmul.f32 0.5, %v425_v13 }
 0x149   :  { %v1022_v20 = vpop.eup %1021  ;;  %v427_v24 = vadd.f32 1.0, %v1020_v16  ;;  %v432_v37 = vmul.f32 0.5, %v424_v15  ;;  %v439_v41 = vmul.f32 %v431_v23, %v1210_v17 }
 0x14a   :  { %v1024_v25 = vpop.eup %1023  ;;  %v429_v29 = vadd.f32 1.0, %v1022_v20  ;;  %v434_v40 = vmul.f32 0.5, %v426_v19  ;;  %v441_v44 = vmul.f32 %v433_v26, %v1212_v18  ;;  %v811_v18 = vld [vmem:[%s1290_s4] ss:$0 sm:$0xff]  ;;  %s1093_s4 = scalar_lea.vmem %s799_s11, 256 }
 0x14b   :  { %v1026_v30 = vpop.eup %1025  ;;  %v435_v31 = vmul.f32 0.5, %v427_v24  ;;  %v428_v32 = vadd.f32 1.0, %v1024_v25  ;;  %v440_v47 = vmul.f32 %v432_v37, %v1214_v21  ;;  %v74_v60 = vadd.f32 %v811_v18, %v1203_v34  ;;  %p1094_p10 = scmp.ne.s32.totalorder %s799_s11, %s1093_s4  ;;  %p1099_p12 = scmp.lt.s32.totalorder %s1093_s4, %s1093_s4 }
 0x14c   :  { %v437_v38 = vmul.f32 0.5, %v429_v29  ;;  %v430_v39 = vadd.f32 1.0, %v1026_v30  ;;  %v442_v50 = vmul.f32 %v434_v40, %v1216_v22  ;;  %v73_v22 = vadd.f32 %v811_v18, %v1201_v33 }
 0x14d   :  { %v443_v42 = vmul.f32 %v435_v31, %v1222_v27  ;;  %v436_v43 = vmul.f32 0.5, %v428_v32  ;;  %p1100_p13 = por %p1099_p12, %p1098_p11 }
 0x14e   :  { %v445_v45 = vmul.f32 %v437_v38, %v1224_v28  ;;  %v438_v46 = vmul.f32 0.5, %v430_v39 }
 0x14f   :  { %v444_v48 = vmul.f32 %v436_v43, %v1230_v35  ;;  %v447_v49 = vpack.c.bf16 %v443_v42, %v439_v41  ;;  %p1101_p0 = pnand %p1100_p13, %p1094_p10 }
 0x150   :  { %v446_v51 = vmul.f32 %v438_v46, %v1232_v36  ;;  %v449_v52 = vpack.c.bf16 %v445_v45, %v441_v44 }
 0x151   :  { %v448_v53 = vpack.c.bf16 %v444_v48, %v440_v47 }
 0x152   :  { %v450_v17 = vpack.c.bf16 %v446_v51, %v442_v50 }
 0x153   :  { %739 = vmatprep.mubr.bf16.mxu0 %v448_v53 }
 0x154   :  { %780 = vmatprep.mubr.bf16.mxu1 %v450_v17  ;;  %740 = vmatmul.mubr.bf16.vlgmr.msra.gmra.mrb[4].mxu0 %v447_v49 }
 0x155   :  { %781 = vmatmul.mubr.bf16.vlgmr.msra.gmra.mrb[4].mxu1 %v449_v52 }
 0x227   :  { %v892_v27 = vpop.f32.mrb[4].mxu0 }
 0x228   :  { %v914_v21 = vpop.f32.mrb[4].mxu1  ;;  %v893_v28 = vpop.f32.mrb[5].mxu0 }
 0x229   :  { %v894_v35 = vadd.f32 %v893_v28, %v892_v27  ;;  %v915_v54 = vpop.f32.mrb[5].mxu1  ;;  %v895_v55 = vpop.f32.mrb[6].mxu0 }
 0x22a   :  { %v916_v36 = vadd.f32 %v915_v54, %v914_v21  ;;  %v917_v56 = vpop.f32.mrb[6].mxu1  ;;  %v896_v57 = vpop.f32.mrb[7].mxu0 }
 0x22b   :  { %v897_v58 = vadd.f32 %v896_v57, %v895_v55  ;;  %v918_v59 = vpop.f32.mrb[7].mxu1 }
 0x22c   :  { %v783_v61 = vadd.f32 %v916_v36, %v894_v35  ;;  %v919_v62 = vadd.f32 %v918_v59, %v917_v56 }
 0x22e   :  { %v789_v63 = vadd.f32 %v783_v61, %v73_v22  ;;  %v786_v0 = vadd.f32 %v919_v62, %v897_v58 }
 0x230   :  { %791 = vst [vmem:[#allocation8] sm:$0xff] %v789_v63  ;;  %v790_v1 = vadd.f32 %v786_v0, %v74_v60 }
 0x232   :  { %792 = vst [vmem:[#allocation8 + $0x8] sm:$0xff] %v790_v1 }
 0x233   :  { %1104 = shalt.err (!%p1101_p0)
}
 0x234   :  { %s1105_s14 = scalar_lea.hbm %s1291_s5, 256 }
 0x235   :  { %p1106_p1 = scmp.ne.s32.totalorder %s1291_s5, %s1105_s14  ;;  %p1109_p2 = scmp.lt.u32.totalorder %s1105_s14, %s1291_s5 }
 0x237   :  { %p1111_p3 = pnand %p1109_p2, %p1106_p1 }
 0x239   :  { %1114 = shalt.err (!%p1111_p3)
}
 0x23a   :  { %804 = dma.vmem_to_hbm [thread:$0]  %s799_s11, 256, %s1291_s5, [#allocation4], %s1125_s1, %s1125_s1, %s1126_s17  }
 0x23b   :  { %1119 = dma.done.wait [#allocation4], 256  }
 0x23c   :  { %1120 = vsyncadd [#allocation4], 4294967040 }
 0x23d   :  { %808 = vsyncpa [#allocation3], 1 }
 0x23e   :  { %809 = vsyncpa [#allocation6], 1 }
 0x23f   :  { %810 = vsyncpa [#allocation4], 1 }

</bundles_post_ra>
